<compile_context>
chip_gen: v7x
topology: tpu7x:2x2x1
jax: 0.10.0
libtpu: 0.0.40
codegen_flags: <defaults>
</compile_context>

<pallas_src>
import functools

import numpy as np

import jax
import jax.numpy as jnp
from jax import lax
from jax.experimental import pallas as pl
from jax.experimental.pallas import tpu as pltpu


# ---------------------------------------------------------------------------
# Pallas kernel: gradient magnitude of flattened channel-0 planes + border mask
# ---------------------------------------------------------------------------
def _grad_depth_kernel(x_ref, m_ref, o_ref, *, W, L):
    # x_ref: (NB, L)  lane-dense flattened planes (L = H*W), channel 0 only
    # m_ref: (1,  L)  f32 border mask (0/1), same block every grid step
    # o_ref: (NB, L)  f32 output
    y = x_ref[...].astype(jnp.float32)

    # [-1, 0, 1] stencils via lane rolls (non-negative shifts only).  Wraparound only
    # touches pixels in row/col 0 or H-1/W-1, all inside the zeroed 3-pixel border,
    # so this matches conv2d(padding=1) exactly on every unmasked pixel.
    h = pltpu.roll(y, L - 1, axis=1) - pltpu.roll(y, 1, axis=1)   # ~ x[i, j+1] - x[i, j-1]
    v = pltpu.roll(y, L - W, axis=1) - pltpu.roll(y, W, axis=1)   # ~ x[i+1, j] - x[i-1, j]
    g = jnp.sqrt(v * v + h * h + 1e-6)

    o_ref[...] = (g * m_ref[...]).astype(o_ref.dtype)             # (1,L) bcast over NB


# ---------------------------------------------------------------------------
# Builders
# ---------------------------------------------------------------------------
@functools.lru_cache(maxsize=None)
def _border_mask_np(H, W):
    m = np.ones((H, W), np.float32)
    m[:3, :] = 0.0
    m[-3:, :] = 0.0
    m[:, :3] = 0.0
    m[:, -3:] = 0.0
    return m.reshape(1, H * W)


def _pick_block_rows(N, L):
    """Images per grid step: ~1 MiB of f32 output per block (near-roofline DMAs while
    staying well inside v5e's 16 MiB / v7x's 32 MiB default scoped VMEM with double
    buffering + temporaries); keep >= 2 grid steps when possible (v7x has 2 TCs)."""
    target_elems = (1 << 20) // 4
    nb = max(1, target_elems // max(1, L))
    if N >= 2:
        nb = min(nb, pl.cdiv(N, 2))        # >= 2 "parallel" grid steps where possible
    nb = min(nb, N)
    if nb != N:
        # Keep the sublane (second-minor) block dim 8-aligned when not spanning the
        # whole batch; for tiny batches just take the full batch in one block.
        nb = (nb // 8) * 8
        if nb == 0:
            nb = N
    return nb


@functools.lru_cache(maxsize=None)
def _build_grad_depth(N, H, W, in_dtype_name):
    L = H * W
    in_dtype = jnp.dtype(in_dtype_name)
    nb = _pick_block_rows(N, L)
    grid = (pl.cdiv(N, nb),)

    kern = functools.partial(_grad_depth_kernel, W=W, L=L)
    cost = pl.CostEstimate(
        flops=7 * N * L,                   # 2 sub + 2 mul + 2 add + 1 mask mul
        transcendentals=N * L,             # sqrt
        bytes_accessed=N * L * (in_dtype.itemsize + 4) + L * 4,
    )

    return pl.pallas_call(
        kern,
        out_shape=jax.ShapeDtypeStruct((N, L), jnp.float32),
        grid=grid,
        in_specs=[
            pl.BlockSpec((nb, L), lambda n: (n, 0)),
            pl.BlockSpec((1, L), lambda n: (0, 0)),   # constant block: DMA'd once
        ],
        out_specs=pl.BlockSpec((nb, L), lambda n: (n, 0)),
        compiler_params=pltpu.CompilerParams(
            dimension_semantics=("parallel",),
            vmem_limit_bytes=32 * 1024 * 1024,
        ),
        cost_estimate=cost,
    )


def get_gradient_depth(x):
    """x: (N, C, H, W) in PyTorch NCHW layout. Returns (N, 1, H, W) float32."""
    N, C, H, W = x.shape
    x0 = x if C == 1 else x[:, :1]         # channel 0 only (free when C == 1)
    x2d = x0.reshape(N, H * W)             # lane-dense flattened planes
    mask = jnp.asarray(_border_mask_np(H, W))
    g2d = _build_grad_depth(N, H, W, str(x2d.dtype))(x2d, mask)
    return g2d.reshape(N, 1, H, W)


# ---------------------------------------------------------------------------
# Pure-JAX reference (mirrors the PyTorch module op-for-op)
# ---------------------------------------------------------------------------
def _reference(x):
    x0 = x[:, 0:1].astype(jnp.float32)                        # (N, 1, H, W)
    kv = jnp.array([[0., -1., 0.], [0., 0., 0.], [0., 1., 0.]],
                   jnp.float32).reshape(1, 1, 3, 3)
    kh = jnp.array([[0., 0., 0.], [-1., 0., 1.], [0., 0., 0.]],
                   jnp.float32).reshape(1, 1, 3, 3)

    def conv(inp, w):
        return lax.conv_general_dilated(
            inp, w, window_strides=(1, 1), padding=[(1, 1), (1, 1)],
            dimension_numbers=("NCHW", "OIHW", "NCHW"))

    v = conv(x0, kv)
    h = conv(x0, kh)
    g = jnp.sqrt(v * v + h * h + 1e-6)

    H, W = x.shape[2], x.shape[3]
    mask = jnp.ones((1, 1, H, W), jnp.float32)
    mask = mask.at[:, :, :3, :].set(0.0).at[:, :, -3:, :].set(0.0)
    mask = mask.at[:, :, :, :3].set(0.0).at[:, :, :, -3:].set(0.0)
    return g * mask


# ---------------------------------------------------------------------------
if __name__ == "__main__":
    key = jax.random.PRNGKey(0)
    k1, k2 = jax.random.split(key)

    # Depth-style input (C=1) and a multi-channel input (module only reads channel 0).
    x_depth = jax.random.uniform(k1, (2, 1, 16, 16), jnp.float32)
    x_multi = jax.random.uniform(k2, (2, 4, 16, 16), jnp.float32)

    fwd = jax.jit(get_gradient_depth)

    for x in (x_depth, x_multi):
        out = fwd(x)
        jax.block_until_ready(out)
        ref = _reference(x)
        assert out.shape == (x.shape[0], 1, x.shape[2], x.shape[3]), out.shape
        err = float(jnp.max(jnp.abs(out - ref)))
        assert jnp.allclose(out, ref, atol=1e-5, rtol=1e-5), err

    print("KERNEL_OK")
</pallas_src>

<mosaic_0001>
module attributes {stable_mosaic.version = 11 : i64} {
  func.func @_grad_depth_kernel(%arg0: i32, %arg1: memref<2x256xf32, #tpu.memory_space<vmem>>, %arg2: memref<1x256xf32, #tpu.memory_space<vmem>>, %arg3: memref<2x256xf32, #tpu.memory_space<vmem>>) attributes {dimension_semantics = [#tpu.dimension_semantics<parallel>], iteration_bounds = array<i64: 1>, scalar_prefetch = 0 : i64, scratch_operands = 0 : i64, tpu.core_type = #tpu.core_type<tc>, window_params = [{transform_indices = @transform_0, window_bounds = array<i64: 2, 256>}, {pipeline_mode = #tpu.pipeline_mode<synchronous>, transform_indices = @transform_1, window_bounds = array<i64: 1, 256>}, {transform_indices = @transform_2, window_bounds = array<i64: 2, 256>}]} {
    %c0 = arith.constant 0 : index
    %c0_0 = arith.constant 0 : index
    %0 = vector.load %arg1[%c0, %c0_0] : memref<2x256xf32, #tpu.memory_space<vmem>>, vector<2x256xf32>
    %c255_i32 = arith.constant 255 : i32
    %1 = tpu.dynamic_rotate %0 by %c255_i32 dim 1 : vector<2x256xf32>, i32 -> vector<2x256xf32>
    %c1_i32 = arith.constant 1 : i32
    %2 = tpu.dynamic_rotate %0 by %c1_i32 dim 1 : vector<2x256xf32>, i32 -> vector<2x256xf32>
    %3 = arith.subf %1, %2 : vector<2x256xf32>
    %c240_i32 = arith.constant 240 : i32
    %4 = tpu.dynamic_rotate %0 by %c240_i32 dim 1 : vector<2x256xf32>, i32 -> vector<2x256xf32>
    %c16_i32 = arith.constant 16 : i32
    %5 = tpu.dynamic_rotate %0 by %c16_i32 dim 1 : vector<2x256xf32>, i32 -> vector<2x256xf32>
    %6 = arith.subf %4, %5 : vector<2x256xf32>
    %7 = arith.mulf %6, %6 : vector<2x256xf32>
    %8 = arith.mulf %3, %3 : vector<2x256xf32>
    %9 = arith.addf %7, %8 : vector<2x256xf32>
    %cst = arith.constant 9.99999997E-7 : f32
    %10 = vector.broadcast %cst : f32 to vector<2x256xf32>
    %11 = arith.addf %9, %10 : vector<2x256xf32>
    %12 = math.sqrt %11 : vector<2x256xf32>
    %c0_1 = arith.constant 0 : index
    %c0_2 = arith.constant 0 : index
    %13 = vector.load %arg2[%c0_1, %c0_2] : memref<1x256xf32, #tpu.memory_space<vmem>>, vector<1x256xf32>
    %14 = vector.broadcast %13 : vector<1x256xf32> to vector<2x256xf32>
    %15 = arith.mulf %12, %14 : vector<2x256xf32>
    %c0_3 = arith.constant 0 : index
    %c0_4 = arith.constant 0 : index
    %16 = vector.load %arg3[%c0_3, %c0_4] : memref<2x256xf32, #tpu.memory_space<vmem>>, vector<2x256xf32>
    tpu.vector_store %arg3[%c0_3, %c0_4], %15 {strides = array<i32>} : memref<2x256xf32, #tpu.memory_space<vmem>>, vector<2x256xf32>,
    return
  }
  func.func @transform_0(%arg0: i32) -> (i32, i32) {
    %c0_i32 = arith.constant 0 : i32
    %c0_i32_0 = arith.constant 0 : i32
    return %arg0, %c0_i32 : i32, i32
  }
  func.func @transform_1(%arg0: i32) -> (i32, i32) {
    %c0_i32 = arith.constant 0 : i32
    %c0_i32_0 = arith.constant 0 : i32
    %c0_i32_1 = arith.constant 0 : i32
    return %c0_i32, %c0_i32_0 : i32, i32
  }
  func.func @transform_2(%arg0: i32) -> (i32, i32) {
    %c0_i32 = arith.constant 0 : i32
    %c0_i32_0 = arith.constant 0 : i32
    return %arg0, %c0_i32 : i32, i32
  }
}

</mosaic_0001>

<bundles_post_ra>
// kernel: get_gradient_depth.1
= control target key start
LH: loop header
LB: loop body
LE: loop exit
PB: predicated region body
PF: predicated region fallthrough
CT: control target
= control target key end

     0   :  { %s119_s11 = smov 1   ;;  %s120_s12 = smov 127   ;;  %v27_v2 = vlaneseq  ;;  %s147_s0 = inlined_call_operand.vmem [shape: f32[2,256], index: 0, kind: input, shape index: {}]   ;;  %s148_s1 = inlined_call_operand.vmem [shape: f32[1,256], index: 1, kind: input, shape index: {}]   ;;  %s149_s2 = inlined_call_operand.vmem [shape: f32[2,256], index: 2, kind: output, shape index: {}]  }
   0x1   :  { %v109_v0 = vld.sshfl [vmem:[%s147_s0] sm:$0x33 pattern:$0x76325410]  ;;  %s121_s13 = smov 112   ;;  %s122_s14 = smov 16  }
   0x2   :  { %32 = vrot.lane.b32.xlu1 %v109_v0, %s119_s11  ;;  %23 = vrot.lane.b32.xlu0 %v109_v0, %s120_s12  ;;  %v20_v1 = vcombine.high %v109_v0, %v109_v0  ;;  %v28_v5 = vand.u32 127, %v27_v2  ;;  %v82_v32 = vshrl.u32 %v27_v2, 7  ;;  %v79_v34 = vld [vmem:[%s148_s1] sm:$0x3] }
   0x4   :  { %vm36_vm0 = vcmp.lt.s32.totalorder %v28_v5, 1  ;;  %vm29_vm1 = vcmp.lt.s32.totalorder %v28_v5, 127  ;;  %vm45_vm2 = vcmp.lt.s32.totalorder %v28_v5, 112  ;;  %vm52_vm3 = vcmp.lt.s32.totalorder %v28_v5, 16 }
   0x5   :  { %v83_v33 = vsub.s32 0, %v82_v32  ;;  %v87_v35 = vsub.s32 1, %v82_v32 }
   0x6   :  { %34 = vrot.lane.b32.xlu1 %v20_v1, %s119_s11  ;;  %25 = vrot.lane.b32.xlu0 %v20_v1, %s120_s12 }
   0x7   :  { %v84_v38 = vrot.slane %v79_v34, %v83_v33  ;;  %v88_v40 = vrot.slane %v79_v34, %v87_v35 }
   0xa   :  { %43 = vrot.lane.b32.xlu1 %v20_v1, %s121_s13  ;;  %41 = vrot.lane.b32.xlu0 %v109_v0, %s121_s13 }
   0xe   :  { %50 = vrot.lane.b32.xlu1 %v20_v1, %s122_s14  ;;  %48 = vrot.lane.b32.xlu0 %v109_v0, %s122_s14 }
  0x74   :  { %v33_v3 = vpop.permute.xlu1 %32  ;;  %v24_v4 = vpop.permute.xlu0 %23 }
  0x78   :  { %v35_v6 = vpop.permute.xlu1 %34  ;;  %v26_v7 = vpop.permute.xlu0 %25 }
  0x79   :  { %v37_v10 = vsel %vm36_vm0, %v33_v3, %v35_v6  ;;  %v38_v11 = vsel %vm36_vm0, %v35_v6, %v33_v3  ;;  %v30_v12 = vsel %vm29_vm1, %v24_v4, %v26_v7  ;;  %v31_v13 = vsel %vm29_vm1, %v26_v7, %v24_v4 }
  0x7a   :  { %v39_v14 = vsub.f32 %v30_v12, %v38_v11  ;;  %v40_v15 = vsub.f32 %v31_v13, %v37_v10 }
  0x7c   :  { %v44_v8 = vpop.permute.xlu1 %43  ;;  %v42_v9 = vpop.permute.xlu0 %41  ;;  %v59_v24 = vmul.f32 %v39_v14, %v39_v14  ;;  %v60_v25 = vmul.f32 %v40_v15, %v40_v15 }
  0x7d   :  { %v46_v18 = vsel %vm45_vm2, %v42_v9, %v44_v8  ;;  %v47_v19 = vsel %vm45_vm2, %v44_v8, %v42_v9 }
  0x80   :  { %v51_v16 = vpop.permute.xlu1 %50  ;;  %v49_v17 = vpop.permute.xlu0 %48 }
  0x81   :  { %v53_v20 = vsel %vm52_vm3, %v49_v17, %v51_v16  ;;  %v54_v21 = vsel %vm52_vm3, %v51_v16, %v49_v17 }
  0x82   :  { %v55_v22 = vsub.f32 %v46_v18, %v54_v21  ;;  %v56_v23 = vsub.f32 %v47_v19, %v53_v20 }
  0x84   :  { %v57_v26 = vmul.f32 %v55_v22, %v55_v22  ;;  %v58_v27 = vmul.f32 %v56_v23, %v56_v23 }
  0x86   :  { %v61_v28 = vadd.f32 %v59_v24, %v57_v26  ;;  %v62_v29 = vadd.f32 %v60_v25, %v58_v27 }
  0x88   :  { %v63_v30 = vadd.f32 1e-06, %v61_v28  ;;  %v64_v31 = vadd.f32 1e-06, %v62_v29 }
  0x8a   :  { %115 = vrsqrt.f32 %v63_v30  ;;  %vm67_vm4 = vcmp.eq.f32.partialorder %v63_v30, inf  ;;  %v70_v41 = vand.u32 2147483648, %v63_v30  ;;  %vm69_vm5 = vcmp.eq.f32.partialorder %v63_v30, 0.0 }
  0x8b   :  { %117 = vrsqrt.f32 %v64_v31  ;;  %vm74_vm6 = vcmp.eq.f32.partialorder %v64_v31, inf  ;;  %v77_v44 = vand.u32 2147483648, %v64_v31  ;;  %vm76_vm7 = vcmp.eq.f32.partialorder %v64_v31, 0.0 }
  0x94   :  { %v116_v36 = vpop.eup %115 }
  0x95   :  { %v118_v37 = vpop.eup %117  ;;  %v66_v39 = vmul.f32 %v116_v36, %v63_v30 }
  0x96   :  { %v73_v42 = vmul.f32 %v118_v37, %v64_v31 }
  0x97   :  { %v68_v43 = vsel %vm67_vm4, %v63_v30, %v66_v39 }
  0x98   :  { %v71_v45 = vsel %vm69_vm5, %v70_v41, %v68_v43  ;;  %v75_v46 = vsel %vm74_vm6, %v64_v31, %v73_v42 }
  0x99   :  { %v78_v47 = vsel %vm76_vm7, %v77_v44, %v75_v46  ;;  %v91_v48 = vmul.f32 %v84_v38, %v71_v45 }
  0x9a   :  { %v92_v49 = vmul.f32 %v88_v40, %v78_v47 }
  0x9c   :  { %v95_v50 = vcombine.low %v91_v48, %v92_v49 }
  0x9e   :  { %110 = vst.sshfl [vmem:[%s149_s2] sm:$0x33 pattern:$0x76325410] %v95_v50 }

</bundles_post_ra>
